<compile_context>
chip_gen: v7x
topology: tpu7x:2x2x1
jax: 0.10.0
libtpu: 0.0.40
codegen_flags: <defaults>
</compile_context>

<pallas_src>
import functools
import math

import jax
import jax.numpy as jnp
import numpy as np
from jax.experimental import pallas as pl
from jax.experimental.pallas import tpu as pltpu


def _round_up(x, m):
    return ((x + m - 1) // m) * m


# ----------------------------- exact resample matrix -------------------------
def _lanczos(x, a):
    cond = np.logical_and(-a < x, x < a)
    out = np.where(cond, np.sinc(x) * np.sinc(x / a), 0.0)
    return out / out.sum()


def _ramp(ratio, width):
    n = math.ceil(width / ratio + 1)
    out = np.arange(n, dtype=np.float64) * ratio
    return np.concatenate([-out[1:][::-1], out])[1:-1]


def _lanczos_conv_matrix(h, dh):
    """(h, h) matrix: reflect-pad + conv with the lanczos prefilter (identity if dh >= h)."""
    if dh >= h:
        return np.eye(h, dtype=np.float64)
    k = _lanczos(_ramp(dh / h, 2), 2)
    ksize = k.shape[0]
    pad = (ksize - 1) // 2

    def reflect(i):
        if i < 0:
            return -i
        if i >= h:
            return 2 * (h - 1) - i
        return i

    L = np.zeros((h, h), dtype=np.float64)
    for out_i in range(h):
        for j in range(ksize):
            L[out_i, reflect(out_i - pad + j)] += k[j]
    return L


def _bicubic_matrix(h, dh, A=-0.75):
    """(dh, h) matrix equal to F.interpolate(mode='bicubic', align_corners=True)."""

    def c1(x):  # |x| <= 1
        return ((A + 2.0) * x - (A + 3.0)) * x * x + 1.0

    def c2(x):  # 1 < |x| < 2
        return ((A * x - 5.0 * A) * x + 8.0 * A) * x - 4.0 * A

    B = np.zeros((dh, h), dtype=np.float64)
    scale = (h - 1) / (dh - 1) if dh > 1 else 0.0
    for i in range(dh):
        x = i * scale
        x0 = int(np.floor(x))
        t = x - x0
        coeffs = (c2(t + 1.0), c1(t), c1(1.0 - t), c2(2.0 - t))
        for m in range(4):
            src = min(max(x0 - 1 + m, 0), h - 1)
            B[i, src] += coeffs[m]
    return B


@functools.lru_cache(maxsize=None)
def _resample_matrix(s, cut_size):
    """Exact (cut_size, s) matrix M such that resample(crop) == M @ crop @ M.T."""
    M = _bicubic_matrix(s, cut_size) @ _lanczos_conv_matrix(s, cut_size)
    return M.astype(np.float32)


# ----------------------------- Pallas kernel ---------------------------------
def _cutout_kernel(
    # scalar prefetch (SMEM, int32): aligned window offsets in (8,128) units
    oyb_ref, oxb_ref,
    # inputs
    mrow_ref,    # (1, cs, hw)     bf16 : row-resample matrix (y-shift baked in)
    mcol_ref,    # (1, ww, cs)     bf16 : col-resample matrix^T (x-shift baked in)
    noise_ref,   # (1, nc, cs, cs) f32  : fac * N(0,1), pre-scaled
    img_ref,     # (nc, Hp, Wp)    bf16 : padded image, HBM (pl.ANY, manual DMA)
    # output
    out_ref,     # (1, nc, cs, cs) f32
    # scratch
    xbuf,        # (2, nc, hw, ww) bf16 : double-buffered crop windows
    copy_sem,    # (2,) DMA semaphores
    *, nc, hw, ww, cs, per_core):
    core = pl.program_id(0)     # cutout chunk (sharded across TCs on v7x)
    j = pl.program_id(1)        # cutout within the chunk
    q = core * per_core + j
    slot = j & 1

    def window_copy(idx, buf_slot):
        # Offsets stored as (row//8, col//128); multiplying back keeps the
        # (8,128) alignment of the DMA visible to the compiler.
        oy = oyb_ref[idx] * 8
        ox = oxb_ref[idx] * 128
        return pltpu.make_async_copy(
            img_ref.at[:, pl.ds(oy, hw), pl.ds(ox, ww)],
            xbuf.at[buf_slot],
            copy_sem.at[buf_slot],
        )

    # Prime the double buffer once per core chunk (NOT q == 0: on v7x core 1
    # never sees q == 0 and must start its own first DMA).
    @pl.when(j == 0)
    def _():
        window_copy(q, 0).start()

    # Wait for this cutout's window, then immediately prefetch the next one so
    # its HBM read overlaps this step's matmuls.
    window_copy(q, slot).wait()

    @pl.when(j + 1 < per_core)
    def _():
        window_copy(q + 1, 1 - slot).start()

    mr = mrow_ref[0]     # (cs, hw) bf16
    mc = mcol_ref[0]     # (ww, cs) bf16
    x = xbuf[slot]       # (nc, hw, ww) bf16

    # Row resample per channel (mr is shared, crops differ).  cs % 8 == 0 and
    # ww % 128 == 0 in practice, so the concatenated (nc*cs, ww) operand is
    # tile-aligned and the concat/reshape below are layout no-ops.
    u = jnp.concatenate(
        [jnp.dot(mr, x[c], preferred_element_type=jnp.float32).astype(jnp.bfloat16)
         for c in range(nc)], axis=0)                        # (nc*cs, ww)

    # One big lane/sublane-dense column-resample matmul, one fused f32 noise
    # add, one store of the whole (nc, cs, cs) block.
    r = jnp.dot(u, mc, preferred_element_type=jnp.float32)   # (nc*cs, cs) f32
    out_ref[0] = (r.reshape(nc, cs, cs) + noise_ref[0]).astype(out_ref.dtype)


def _make_cutouts_pallas(oyb, oxb, mrow, mcol, noise, img):
    nc, Hp, Wp = img.shape
    cutn, cs, hw = mrow.shape
    ww = mcol.shape[1]

    # Split cutouts over a leading "parallel" axis: on v7x each TensorCore runs
    # one chunk; on 1-TC chips it is just a nested sequential loop.
    ncore = 2 if (cutn % 2 == 0 and cutn >= 2) else 1
    per_core = cutn // ncore

    kern = functools.partial(_cutout_kernel, nc=nc, hw=hw, ww=ww, cs=cs,
                             per_core=per_core)

    def _idx3(i, j, oyb_r, oxb_r):
        return (i * per_core + j, 0, 0)

    def _idx4(i, j, oyb_r, oxb_r):
        return (i * per_core + j, 0, 0, 0)

    grid_spec = pltpu.PrefetchScalarGridSpec(
        num_scalar_prefetch=2,                 # offy//8, offx//128 (int32, SMEM)
        grid=(ncore, per_core),
        in_specs=[
            pl.BlockSpec((1, cs, hw), _idx3),        # row matrix (bf16)
            pl.BlockSpec((1, ww, cs), _idx3),        # col matrix^T (bf16)
            pl.BlockSpec((1, nc, cs, cs), _idx4),    # pre-scaled noise (f32)
            pl.BlockSpec(memory_space=pl.ANY),       # padded image stays in HBM
        ],
        out_specs=pl.BlockSpec((1, nc, cs, cs), _idx4),
        scratch_shapes=[
            pltpu.VMEM((2, nc, hw, ww), jnp.bfloat16),   # bf16 window double buffer
            pltpu.SemaphoreType.DMA((2,)),
        ],
    )

    # Tight VMEM budget.  bf16 halves the window double buffer; only raise the
    # scoped limit when needed, with a few MiB headroom (v7x VMEM is 64 MiB).
    vmem_need = (2 * nc * hw * ww * 2              # window double buffer (bf16)
                 + 2 * (cs * hw + ww * cs) * 2     # resample-matrix blocks (bf16)
                 + 4 * nc * cs * cs * 4            # noise + output blocks (f32)
                 + nc * cs * ww * 2                # concatenated row-resample result
                 + (cs * ww + nc * cs * cs) * 4)   # f32 matmul temporaries
    params = {"dimension_semantics": ("parallel", "arbitrary")}
    if vmem_need > (12 << 20):
        params["vmem_limit_bytes"] = int(min(vmem_need + (4 << 20), 120 << 20))

    return pl.pallas_call(
        kern,
        out_shape=jax.ShapeDtypeStruct((cutn, nc, cs, cs), jnp.float32),
        grid_spec=grid_spec,
        compiler_params=pltpu.CompilerParams(**params),
    )(oyb, oxb, mrow, mcol, noise, img)


# ----------------------------- MakeCutouts.forward ---------------------------
def make_cutouts_forward(input_nchw, seed, *, cut_size, cutn, cut_pow=1.0, noise_fac=0.1):
    n, c, sideY, sideX = input_nchw.shape
    assert n == 1, "reference noise broadcast (facs: [cutn,1,1,1]) requires batch == 1"
    max_size = min(sideX, sideY)
    min_size = min(sideX, sideY, cut_size)

    # Aligned window footprint: row start rounded down to 8, col start to 128,
    # and the fetched rectangle always covers the crop (residual shift < tile).
    hw = _round_up(max_size + 7, 8)
    ww = _round_up(max_size + 127, 128)

    # Host-side randomness (sizes / offsets / facs) with numpy only.
    rng = np.random.default_rng(seed)
    oyb = np.empty((cutn,), np.int32)
    oxb = np.empty((cutn,), np.int32)
    mrow = np.zeros((cutn, cut_size, hw), np.float32)
    mcol = np.zeros((cutn, ww, cut_size), np.float32)
    for q in range(cutn):
        size = int(float(rng.random()) ** cut_pow * (max_size - min_size) + min_size)
        offx = int(rng.integers(0, sideX - size + 1))
        offy = int(rng.integers(0, sideY - size + 1))
        oyb[q] = offy // 8
        oxb[q] = offx // 128
        dy = offy - int(oyb[q]) * 8
        dx = offx - int(oxb[q]) * 128
        M = _resample_matrix(size, cut_size)           # (cut_size, size), cached per size
        # Bake the residual (dy, dx) shift into the matrices: rows/cols outside
        # the crop get zero weight, so the aligned over-fetch is exact.
        mrow[q, :, dy:dy + size] = M
        mcol[q, dx:dx + size, :] = M.T
    if noise_fac:
        facs = (rng.uniform(0.0, 1.0, size=(cutn,)) * float(noise_fac)).astype(np.float32)
    else:
        facs = np.zeros((cutn,), np.float32)

    # Pad ONCE so every aligned (hw, ww) window is in bounds; padded pixels get
    # zero weight in mrow/mcol.  bf16 halves the per-cutout window DMA.
    pad_y = _round_up(sideY + hw, 8) - sideY
    pad_x = _round_up(sideX + ww, 128) - sideX
    img = jnp.pad(jnp.asarray(input_nchw[0], jnp.float32),
                  ((0, 0), (0, pad_y), (0, pad_x))).astype(jnp.bfloat16)

    # Per-cutout noise, pre-scaled by fac.  Statistically (not bit-wise)
    # equivalent to torch's randn_like.
    # TODO(synk): draw this on-chip (pltpu.prng_seed / stateful_normal) once the
    # interpret/CPU path supports it; that removes the (cutn, c, cs, cs) stream.
    noise = (jax.random.normal(jax.random.PRNGKey(seed),
                               (cutn, c, cut_size, cut_size), dtype=jnp.float32)
             * jnp.asarray(facs)[:, None, None, None])

    # TODO(synk): Kornia random augmentations (RandomHorizontalFlip, RandomSharpness,
    # RandomAffine, RandomPerspective, ColorJitter) have no clean Pallas equivalent;
    # they are applied as identity here.

    out = _make_cutouts_pallas(
        jnp.asarray(oyb), jnp.asarray(oxb),
        jnp.asarray(mrow, dtype=jnp.bfloat16),
        jnp.asarray(mcol, dtype=jnp.bfloat16),
        noise, img)
    return out  # (cutn * n, c, cut_size, cut_size), NCHW like torch.cat


if __name__ == "__main__":
    key = jax.random.PRNGKey(0)

    # Small synthetic input consistent with MakeCutouts: one NCHW image.
    x = jax.random.uniform(key, (1, 3, 16, 16), dtype=jnp.float32)

    out = make_cutouts_forward(x, seed=0, cut_size=8, cutn=8, cut_pow=1.0, noise_fac=0.1)
    out = jax.block_until_ready(out)
    assert out.shape == (8, 3, 8, 8)
    assert bool(jnp.all(jnp.isfinite(out)))
    print("KERNEL_OK")
</pallas_src>

<mosaic_0001>
module attributes {stable_mosaic.version = 11 : i64} {
  func.func @_cutout_kernel(%arg0: i32, %arg1: i32, %arg2: memref<8xi32, #tpu.memory_space<smem>>, %arg3: memref<8xi32, #tpu.memory_space<smem>>, %arg4: memref<1x8x24xbf16, #tpu.memory_space<vmem>>, %arg5: memref<1x256x8xbf16, #tpu.memory_space<vmem>>, %arg6: memref<1x3x8x8xf32, #tpu.memory_space<vmem>>, %arg7: memref<3x40x384xbf16, #tpu.memory_space<any>>, %arg8: memref<1x3x8x8xf32, #tpu.memory_space<vmem>>, %arg9: memref<2x3x24x256xbf16, #tpu.memory_space<vmem>>, %arg10: memref<2x!tpu.dma_semaphore, #tpu.memory_space<semaphore_mem>>) attributes {dimension_semantics = [#tpu.dimension_semantics<parallel>, #tpu.dimension_semantics<arbitrary>], iteration_bounds = array<i64: 2, 4>, scalar_prefetch = 2 : i64, scratch_operands = 2 : i64, tpu.core_type = #tpu.core_type<tc>, window_params = [{transform_indices = @transform_0, window_bounds = array<i64: 1, 8, 24>}, {transform_indices = @transform_1, window_bounds = array<i64: 1, 256, 8>}, {transform_indices = @transform_2, window_bounds = array<i64: 1, 3, 8, 8>}, {}, {transform_indices = @transform_4, window_bounds = array<i64: 1, 3, 8, 8>}]} {
    %c4_i32 = arith.constant 4 : i32
    %0 = arith.muli %arg0, %c4_i32 : i32
    %1 = arith.addi %0, %arg1 : i32
    %c1_i32 = arith.constant 1 : i32
    %2 = arith.andi %arg1, %c1_i32 : i32
    %c0_i32 = arith.constant 0 : i32
    %3 = arith.cmpi eq, %arg1, %c0_i32 : i32
    %4 = arith.extui %3 : i1 to i32
    %c0_i32_0 = arith.constant 0 : i32
    %5 = arith.cmpi ne, %4, %c0_i32_0 : i32
    scf.if %5 {
      %49 = arith.index_cast %1 : i32 to index
      %50 = memref.load %arg2[%49] : memref<8xi32, #tpu.memory_space<smem>>
      %c8_i32_27 = arith.constant 8 : i32
      %51 = arith.muli %50, %c8_i32_27 : i32
      %52 = arith.index_cast %1 : i32 to index
      %53 = memref.load %arg3[%52] : memref<8xi32, #tpu.memory_space<smem>>
      %c128_i32_28 = arith.constant 128 : i32
      %54 = arith.muli %53, %c128_i32_28 : i32
      %c0_i32_29 = arith.constant 0 : i32
      %c0_i32_30 = arith.constant 0 : i32
      %c0_i32_31 = arith.constant 0 : i32
      %55 = tpu.memref_slice %arg7[%c0_i32_31, %51, %54] : memref<3x40x384xbf16, #tpu.memory_space<any>> -> memref<3x24x256xbf16, #tpu.memory_space<any>>
      %c0_i32_32 = arith.constant 0 : i32
      %c0_i32_33 = arith.constant 0 : i32
      %c0_i32_34 = arith.constant 0 : i32
      %56 = tpu.memref_slice %arg9[%c0_i32_29, %c0_i32_32, %c0_i32_33, %c0_i32_34] : memref<2x3x24x256xbf16, #tpu.memory_space<vmem>> -> memref<1x3x24x256xbf16, #tpu.memory_space<vmem>>
      %57 = tpu.memref_squeeze %56 : memref<1x3x24x256xbf16, #tpu.memory_space<vmem>> -> memref<3x24x256xbf16, #tpu.memory_space<vmem>>
      %58 = tpu.memref_slice %arg10[%c0_i32_30] : memref<2x!tpu.dma_semaphore, #tpu.memory_space<semaphore_mem>> -> memref<1x!tpu.dma_semaphore, #tpu.memory_space<semaphore_mem>>
      %59 = tpu.memref_squeeze %58 : memref<1x!tpu.dma_semaphore, #tpu.memory_space<semaphore_mem>> -> memref<!tpu.dma_semaphore, #tpu.memory_space<semaphore_mem>>
      tpu.enqueue_dma source(%55 : memref<3x24x256xbf16, #tpu.memory_space<any>>) target(%57 : memref<3x24x256xbf16, #tpu.memory_space<vmem>>) target_semaphore(%59 : memref<!tpu.dma_semaphore, #tpu.memory_space<semaphore_mem>>)
    } else {
    }
    %6 = arith.index_cast %1 : i32 to index
    %7 = memref.load %arg2[%6] : memref<8xi32, #tpu.memory_space<smem>>
    %c8_i32 = arith.constant 8 : i32
    %8 = arith.muli %7, %c8_i32 : i32
    %9 = arith.index_cast %1 : i32 to index
    %10 = memref.load %arg3[%9] : memref<8xi32, #tpu.memory_space<smem>>
    %c128_i32 = arith.constant 128 : i32
    %11 = arith.muli %10, %c128_i32 : i32
    %c0_i32_1 = arith.constant 0 : i32
    %12 = tpu.memref_slice %arg7[%c0_i32_1, %8, %11] : memref<3x40x384xbf16, #tpu.memory_space<any>> -> memref<3x24x256xbf16, #tpu.memory_space<any>>
    %c0_i32_2 = arith.constant 0 : i32
    %c0_i32_3 = arith.constant 0 : i32
    %c0_i32_4 = arith.constant 0 : i32
    %13 = tpu.memref_slice %arg9[%2, %c0_i32_2, %c0_i32_3, %c0_i32_4] : memref<2x3x24x256xbf16, #tpu.memory_space<vmem>> -> memref<1x3x24x256xbf16, #tpu.memory_space<vmem>>
    %14 = tpu.memref_squeeze %13 : memref<1x3x24x256xbf16, #tpu.memory_space<vmem>> -> memref<3x24x256xbf16, #tpu.memory_space<vmem>>
    %15 = tpu.memref_slice %arg10[%2] : memref<2x!tpu.dma_semaphore, #tpu.memory_space<semaphore_mem>> -> memref<1x!tpu.dma_semaphore, #tpu.memory_space<semaphore_mem>>
    %16 = tpu.memref_squeeze %15 : memref<1x!tpu.dma_semaphore, #tpu.memory_space<semaphore_mem>> -> memref<!tpu.dma_semaphore, #tpu.memory_space<semaphore_mem>>
    tpu.wait_dma2 semaphore(%16 : memref<!tpu.dma_semaphore, #tpu.memory_space<semaphore_mem>>) src(%12 : memref<3x24x256xbf16, #tpu.memory_space<any>>) dst(%14 : memref<3x24x256xbf16, #tpu.memory_space<vmem>>)
    %c1_i32_5 = arith.constant 1 : i32
    %17 = arith.addi %arg1, %c1_i32_5 : i32
    %c4_i32_6 = arith.constant 4 : i32
    %18 = arith.cmpi slt, %17, %c4_i32_6 : i32
    %19 = arith.extui %18 : i1 to i32
    %c0_i32_7 = arith.constant 0 : i32
    %20 = arith.cmpi ne, %19, %c0_i32_7 : i32
    scf.if %20 {
      %c1_i32_27 = arith.constant 1 : i32
      %49 = arith.addi %1, %c1_i32_27 : i32
      %c1_i32_28 = arith.constant 1 : i32
      %50 = arith.subi %c1_i32_28, %2 : i32
      %51 = arith.index_cast %49 : i32 to index
      %52 = memref.load %arg2[%51] : memref<8xi32, #tpu.memory_space<smem>>
      %c8_i32_29 = arith.constant 8 : i32
      %53 = arith.muli %52, %c8_i32_29 : i32
      %54 = arith.index_cast %49 : i32 to index
      %55 = memref.load %arg3[%54] : memref<8xi32, #tpu.memory_space<smem>>
      %c128_i32_30 = arith.constant 128 : i32
      %56 = arith.muli %55, %c128_i32_30 : i32
      %c0_i32_31 = arith.constant 0 : i32
      %57 = tpu.memref_slice %arg7[%c0_i32_31, %53, %56] : memref<3x40x384xbf16, #tpu.memory_space<any>> -> memref<3x24x256xbf16, #tpu.memory_space<any>>
      %c0_i32_32 = arith.constant 0 : i32
      %c0_i32_33 = arith.constant 0 : i32
      %c0_i32_34 = arith.constant 0 : i32
      %58 = tpu.memref_slice %arg9[%50, %c0_i32_32, %c0_i32_33, %c0_i32_34] : memref<2x3x24x256xbf16, #tpu.memory_space<vmem>> -> memref<1x3x24x256xbf16, #tpu.memory_space<vmem>>
      %59 = tpu.memref_squeeze %58 : memref<1x3x24x256xbf16, #tpu.memory_space<vmem>> -> memref<3x24x256xbf16, #tpu.memory_space<vmem>>
      %60 = tpu.memref_slice %arg10[%50] : memref<2x!tpu.dma_semaphore, #tpu.memory_space<semaphore_mem>> -> memref<1x!tpu.dma_semaphore, #tpu.memory_space<semaphore_mem>>
      %61 = tpu.memref_squeeze %60 : memref<1x!tpu.dma_semaphore, #tpu.memory_space<semaphore_mem>> -> memref<!tpu.dma_semaphore, #tpu.memory_space<semaphore_mem>>
      tpu.enqueue_dma source(%57 : memref<3x24x256xbf16, #tpu.memory_space<any>>) target(%59 : memref<3x24x256xbf16, #tpu.memory_space<vmem>>) target_semaphore(%61 : memref<!tpu.dma_semaphore, #tpu.memory_space<semaphore_mem>>)
    } else {
    }
    %c0 = arith.constant 0 : index
    %c0_8 = arith.constant 0 : index
    %c0_9 = arith.constant 0 : index
    %21 = vector.load %arg4[%c0, %c0_8, %c0_9] : memref<1x8x24xbf16, #tpu.memory_space<vmem>>, vector<1x8x24xbf16>
    %22 = vector.shape_cast %21 : vector<1x8x24xbf16> to vector<8x24xbf16>
    %c0_10 = arith.constant 0 : index
    %c0_11 = arith.constant 0 : index
    %c0_12 = arith.constant 0 : index
    %23 = vector.load %arg5[%c0_10, %c0_11, %c0_12] : memref<1x256x8xbf16, #tpu.memory_space<vmem>>, vector<1x256x8xbf16>
    %24 = vector.shape_cast %23 : vector<1x256x8xbf16> to vector<256x8xbf16>
    %25 = arith.index_cast %2 : i32 to index
    %c0_13 = arith.constant 0 : index
    %c0_14 = arith.constant 0 : index
    %c0_15 = arith.constant 0 : index
    %26 = vector.load %arg9[%25, %c0_13, %c0_14, %c0_15] : memref<2x3x24x256xbf16, #tpu.memory_space<vmem>>, vector<1x3x24x256xbf16>
    %27 = vector.shape_cast %26 : vector<1x3x24x256xbf16> to vector<3x24x256xbf16>
    %28 = vector.extract_strided_slice %27 {offsets = [0, 0, 0], sizes = [1, 24, 256], strides = [1, 1, 1]} : vector<3x24x256xbf16> to vector<1x24x256xbf16>
    %29 = vector.shape_cast %28 : vector<1x24x256xbf16> to vector<24x256xbf16>
    %cst = arith.constant dense<0.000000e+00> : vector<8x256xf32>
    %30 = tpu.matmul %22, %29, %cst {dimension_numbers = #tpu.dot_dimension_numbers<[1], [0], [0], [1], [0, 0, 1, 1], [], []>} : vector<8x24xbf16>, vector<24x256xbf16>, vector<8x256xf32> -> vector<8x256xf32>
    %31 = arith.truncf %30 : vector<8x256xf32> to vector<8x256xbf16>
    %32 = vector.extract_strided_slice %27 {offsets = [1, 0, 0], sizes = [1, 24, 256], strides = [1, 1, 1]} : vector<3x24x256xbf16> to vector<1x24x256xbf16>
    %33 = vector.shape_cast %32 : vector<1x24x256xbf16> to vector<24x256xbf16>
    %cst_16 = arith.constant dense<0.000000e+00> : vector<8x256xf32>
    %34 = tpu.matmul %22, %33, %cst_16 {dimension_numbers = #tpu.dot_dimension_numbers<[1], [0], [0], [1], [0, 0, 1, 1], [], []>} : vector<8x24xbf16>, vector<24x256xbf16>, vector<8x256xf32> -> vector<8x256xf32>
    %35 = arith.truncf %34 : vector<8x256xf32> to vector<8x256xbf16>
    %36 = vector.extract_strided_slice %27 {offsets = [2, 0, 0], sizes = [1, 24, 256], strides = [1, 1, 1]} : vector<3x24x256xbf16> to vector<1x24x256xbf16>
    %37 = vector.shape_cast %36 : vector<1x24x256xbf16> to vector<24x256xbf16>
    %cst_17 = arith.constant dense<0.000000e+00> : vector<8x256xf32>
    %38 = tpu.matmul %22, %37, %cst_17 {dimension_numbers = #tpu.dot_dimension_numbers<[1], [0], [0], [1], [0, 0, 1, 1], [], []>} : vector<8x24xbf16>, vector<24x256xbf16>, vector<8x256xf32> -> vector<8x256xf32>
    %39 = arith.truncf %38 : vector<8x256xf32> to vector<8x256xbf16>
    %40 = tpu.concatenate %31, %35, %39 in 0 : vector<8x256xbf16>, vector<8x256xbf16>, vector<8x256xbf16> -> vector<24x256xbf16>
    %cst_18 = arith.constant dense<0.000000e+00> : vector<24x8xf32>
    %41 = tpu.matmul %40, %24, %cst_18 {dimension_numbers = #tpu.dot_dimension_numbers<[1], [0], [0], [1], [0, 0, 1, 1], [], []>} : vector<24x256xbf16>, vector<256x8xbf16>, vector<24x8xf32> -> vector<24x8xf32>
    %42 = vector.shape_cast %41 : vector<24x8xf32> to vector<3x8x8xf32>
    %c0_19 = arith.constant 0 : index
    %c0_20 = arith.constant 0 : index
    %c0_21 = arith.constant 0 : index
    %c0_22 = arith.constant 0 : index
    %43 = vector.load %arg6[%c0_19, %c0_20, %c0_21, %c0_22] : memref<1x3x8x8xf32, #tpu.memory_space<vmem>>, vector<1x3x8x8xf32>
    %44 = vector.shape_cast %43 : vector<1x3x8x8xf32> to vector<3x8x8xf32>
    %45 = arith.addf %42, %44 : vector<3x8x8xf32>
    %c0_23 = arith.constant 0 : index
    %c0_24 = arith.constant 0 : index
    %c0_25 = arith.constant 0 : index
    %c0_26 = arith.constant 0 : index
    %46 = vector.load %arg8[%c0_23, %c0_24, %c0_25, %c0_26] : memref<1x3x8x8xf32, #tpu.memory_space<vmem>>, vector<1x3x8x8xf32>
    %47 = vector.shape_cast %46 : vector<1x3x8x8xf32> to vector<3x8x8xf32>
    %48 = vector.shape_cast %45 : vector<3x8x8xf32> to vector<1x3x8x8xf32>
    tpu.vector_store %arg8[%c0_23, %c0_24, %c0_25, %c0_26], %48 {strides = array<i32>} : memref<1x3x8x8xf32, #tpu.memory_space<vmem>>, vector<1x3x8x8xf32>,
    return
  }
  func.func @transform_0(%arg0: i32, %arg1: i32, %arg2: memref<8xi32, #tpu.memory_space<smem>>, %arg3: memref<8xi32, #tpu.memory_space<smem>>) -> (i32, i32, i32) {
    %c4_i32 = arith.constant 4 : i32
    %0 = arith.muli %arg0, %c4_i32 : i32
    %1 = arith.addi %0, %arg1 : i32
    %c0_i32 = arith.constant 0 : i32
    %c0_i32_0 = arith.constant 0 : i32
    %c0_i32_1 = arith.constant 0 : i32
    return %1, %c0_i32, %c0_i32_0 : i32, i32, i32
  }
  func.func @transform_1(%arg0: i32, %arg1: i32, %arg2: memref<8xi32, #tpu.memory_space<smem>>, %arg3: memref<8xi32, #tpu.memory_space<smem>>) -> (i32, i32, i32) {
    %c4_i32 = arith.constant 4 : i32
    %0 = arith.muli %arg0, %c4_i32 : i32
    %1 = arith.addi %0, %arg1 : i32
    %c0_i32 = arith.constant 0 : i32
    %c0_i32_0 = arith.constant 0 : i32
    %c0_i32_1 = arith.constant 0 : i32
    return %1, %c0_i32, %c0_i32_0 : i32, i32, i32
  }
  func.func @transform_2(%arg0: i32, %arg1: i32, %arg2: memref<8xi32, #tpu.memory_space<smem>>, %arg3: memref<8xi32, #tpu.memory_space<smem>>) -> (i32, i32, i32, i32) {
    %c4_i32 = arith.constant 4 : i32
    %0 = arith.muli %arg0, %c4_i32 : i32
    %1 = arith.addi %0, %arg1 : i32
    %c0_i32 = arith.constant 0 : i32
    %c0_i32_0 = arith.constant 0 : i32
    %c0_i32_1 = arith.constant 0 : i32
    %c0_i32_2 = arith.constant 0 : i32
    return %1, %c0_i32, %c0_i32_0, %c0_i32_1 : i32, i32, i32, i32
  }
  func.func @transform_4(%arg0: i32, %arg1: i32, %arg2: memref<8xi32, #tpu.memory_space<smem>>, %arg3: memref<8xi32, #tpu.memory_space<smem>>) -> (i32, i32, i32, i32) {
    %c4_i32 = arith.constant 4 : i32
    %0 = arith.muli %arg0, %c4_i32 : i32
    %1 = arith.addi %0, %arg1 : i32
    %c0_i32 = arith.constant 0 : i32
    %c0_i32_0 = arith.constant 0 : i32
    %c0_i32_1 = arith.constant 0 : i32
    %c0_i32_2 = arith.constant 0 : i32
    return %1, %c0_i32, %c0_i32_0, %c0_i32_1 : i32, i32, i32, i32
  }
}

</mosaic_0001>

<bundles_post_ra>
// kernel: tpu_custom_call.1
= control target key start
LH: loop header
LB: loop body
LE: loop exit
PB: predicated region body
PF: predicated region fallthrough
CT: control target
= control target key end

     0   :  { %s1656_s0 = inlined_call_operand.vmem [shape: s32[8], index: 0, kind: input, shape index: {}]   ;;  %s1657_s2 = inlined_call_operand.vmem [shape: bf16[8,8,24], index: 2, kind: input, shape index: {}]   ;;  %s1658_s3 = inlined_call_operand.vmem [shape: bf16[8,256,8], index: 3, kind: input, shape index: {}]   ;;  %s1659_s4 = inlined_call_operand.vmem [shape: f32[8,3,8,8], index: 4, kind: input, shape index: {}]   ;;  %s1660_s5 = inlined_call_operand.vmem [shape: bf16[3,40,384], index: 5, kind: input, shape index: {}]   ;;  %s1661_s6 = inlined_call_operand.hbm [shape: f32[8,3,8,8], index: 6, kind: output, shape index: {}]   ;;  %s1662_s1 = inlined_call_operand.vmem [shape: s32[8], index: 1, kind: input, shape index: {}]  }
   0x1   :  { %1668 = sst [smem:[#allocation19_spill]] %s1657_s2  ;;  %s11_s23 = sshll.u32 %s1656_s0, 4  ;;  %s12_s23 = int_to_ptr.vmem [resolvable:$true] %s11_s23 }
   0x2   :  { %1669 = sst [smem:[#allocation20_spill]] %s1658_s3  ;;  %s15_s26 = sshll.u32 %s1662_s1, 4  ;;  %s16_s26 = int_to_ptr.vmem [resolvable:$true] %s15_s26 }
   0x3   :  { %1670 = sst [smem:[#allocation21_spill]] %s1659_s4  ;;  %s1256_s27 = scalar_lea.vmem %s12_s23, 16 }
   0x4   :  { %p1257_p0 = scmp.ne.s32.totalorder %s12_s23, %s1256_s27  ;;  %p1261_p1 = scmp.lt.s32.totalorder %s12_s23, %s12_s23 }
   0x5   :  { %p1262_p2 = scmp.lt.s32.totalorder %s1256_s27, %s1256_s27 }
   0x7   :  { %p1263_p3 = por %p1262_p2, %p1261_p1 }
   0x9   :  { %p1264_p4 = pnand %p1263_p3, %p1257_p0 }
   0xb   :  { %1267 = shalt.err (!%p1264_p4)  }
   0xc   :  { %s1380_s28 = smov [#allocation5]   ;;  %s1268_s29 = scalar_lea.vmem %s16_s26, 16 }
   0xd   :  { %14 = dma.vmem_to_smem %s12_s23, 16, %s1380_s28, [#allocation4] }
   0xe   :  { %p1269_p5 = scmp.ne.s32.totalorder %s16_s26, %s1268_s29  ;;  %p1273_p6 = scmp.lt.s32.totalorder %s16_s26, %s16_s26 }
   0xf   :  { %p1274_p7 = scmp.lt.s32.totalorder %s1268_s29, %s1268_s29 }
  0x11   :  { %p1275_p8 = por %p1274_p7, %p1273_p6 }
  0x13   :  { %p1276_p9 = pnand %p1275_p8, %p1269_p5 }
  0x15   :  { %1279 = shalt.err (!%p1276_p9)  }
  0x16   :  { %s1381_s0 = smov [#allocation6]  }
  0x17   :  { %18 = dma.vmem_to_smem %s16_s26, 16, %s1381_s0, [#allocation4] }
  0x18   :  { %1340 = dma.done.wait [#allocation4], 32 }
  0x19   :  { %1341 = vsyncadd [#allocation4], 4294967264 }
  0x1a   :  { %20 = sfence }
  0x1b   :  { %21 = vsyncpa [#allocation8], 0 }
  0x1c   :  { %23 = vsyncpa [#allocation8 + $0x1], 0  ;;  %s1427_s1 = smov 0   ;;  %s1429_s30 = smov 0  }
  0x1d   :  { %s1431_s7 = smov 0   ;;  %s1433_s8 = smov 0  }
  0x1e   :  { %s1435_s9 = smov 0   ;;  %s1437_s10 = smov 0  }
  0x1f   :  { %s1439_s11 = smov 0   ;;  %s1441_s12 = smov 0  }
  0x20 LB: > { %1671 = sst [smem:[#allocation14_spill]] %s1370_s10  ;;  %s1044_s13 = sadd.s32 4294967295, %s1378_s12   ;;  %s1378_s12 = sphi %s1441_s12, %s29_s12   ;;  %s1374_s11 = sphi %s1439_s11, %s1686_s11   ;;  %s1370_s10 = sphi %s1437_s10, %s1685_s10   ;;  %s1366_s9 = sphi %s1435_s9, %s1684_s9   ;;  %s1362_s8 = sphi %s1433_s8, %s1683_s8   ;;  %s1358_s7 = sphi %s1431_s7, %s1689_s7   ;;  %s1354_s30 = sphi %s1429_s30, %s1688_s30   ;;  %s1350_s1 = sphi %s1427_s1, %s1687_s1  }
  0x21   : > { %1672 = sst [smem:[#allocation15_spill]] %s1374_s11  ;;  %s38_s14 = sadd.s32 1, %s1370_s10 }
  0x22   : > { %s41_s15 = sadd.s32 1, %s1374_s11  ;;  %p39_p10 = scmp.ge.s32.totalorder %s38_s14, 4 }
  0x23   : > { %s1052_s16 = sshll.u32 %s1374_s11, 2  ;;  %s1045_s17 = sadd.s32 4294967294, %s1378_s12  }
  0x24   : > { %s136_s18 = sadd.s32 %s1370_s10, %s1052_s16  ;;  %s1691_s14 = smov (%p39_p10, %s38_s14), 0 }
  0x25   : > { %1673 = sst [smem:[#allocation16_spill]] %s1691_s14  ;;  %s1693_s15 = smov (!%p39_p10, %s41_s15), %s1374_s11 }
  0x26   : > { %p152_p11 = scmp.ne.s32.totalorder %s1358_s7, %s1354_s30  ;;  %p153_p12 = scmp.eq.s32.totalorder %s1044_s13, 7 }
  0x27   : > { %p43_p13 = scmp.ge.s32.totalorder %s1693_s15, 2  ;;  %p158_p0 = scmp.ne.s32.totalorder %s1354_s30, %s1350_s1 }
  0x28   : > { %p1480_p1 = por %p153_p12, %p152_p11  ;;  %p159_p2 = scmp.eq.s32.totalorder %s1045_s17, 7 }
  0x29   : > { %s1695_s15 = smov (%p43_p13, %s1693_s15), 0  ;;  %p1056_p4 = scmp.ge.s32.totalorder %s1378_s12, 1 }
  0x2a   : > { %1675 = sst [smem:[#allocation17_spill]] %s1695_s15  ;;  %p1486_p3 = por %p159_p2, %p158_p0 }
  0x2b   : > { %s1053_s21 = sshll.u32 %s1695_s15, 2  ;;  %p212_p5 = scmp.lt.s32.totalorder %s1378_s12, 9 }
  0x2c   : > { %s138_s22 = sadd.s32 %s1053_s21, %s1691_s14  ;;  %s142_s23 = sadd.s32 1, %s1358_s7 }
  0x2d   : > { %s139_s24 = ssub.s32 %s136_s18, %s138_s22  ;;  %p213_p6 = pnand %p1056_p4, %p212_p5 }
  0x2e   : > { %p140_p7 = scmp.eq.s32.totalorder %s139_s24, 0  ;;  %s1663_s26 = sand.u32 (!%p213_p6), 1, %s1354_s30  }
  0x2f   : > { %216 = sbr.rel (%p213_p6) target bundleno = 586 (0x24a), region = 32  ;;  %s1057_s27 = sshll.u32 (!%p213_p6), %s1366_s9, 2 }
  0x30   : > { %s1496_s25 = scalar_select %p140_p7, %s1358_s7, %s142_s23  }
  0x31   : > { %s1146_s28 = smul.u32 (!%p213_p6), 24, %s1663_s26  ;;  %s1503_s29 = sadd.s32 (!%p213_p6), %s1362_s8, %s1057_s27 }
  0x32   : > { %1677 = sst [smem:[#allocation18_spill]] %s1496_s25  ;;  %p253_p8 = scmp.lt.s32.totalorder (!%p213_p6), %s1503_s29, 7 }
  0x33   : > { %s1507_s0 = sand.u32 (!%p213_p6), 1, %s1362_s8  ;;  %s1678_s2 = sld [smem:[#allocation19_spill]] (!%p213_p6) }
  0x34   : > { %s1679_s3 = sld [smem:[#allocation20_spill]] (!%p213_p6)  ;;  %s1680_s4 = sld [smem:[#allocation21_spill]] (!%p213_p6) }
  0x35   : > { %s1525_s11 = scalar_lea.vmem (!%p213_p6), [#allocation7], %s1146_s28  ;;  %p1065_p9 = scmp.ne.s32.totalorder (!%p213_p6), %s1362_s8, 0 }
  0x36   : > { %s254_s13 = scalar_select %p253_p8, %s1503_s29, 7 }
  0x37   : > { %286 = sbr.rel (%p1065_p9) target bundleno = 78 (0x4e), region = 36  ;;  %s289_s18 = sld [smem:[#allocation6 + %s1503_s29]] (!%p1065_p9) }
  0x38   : > { %s1058_s16 = sshll.u32 %s254_s13, 2  ;;  %s1115_s17 = sshll.u32 %s254_s13, 7 }
  0x39   : > { %s1513_s22 = scalar_lea.vmem %s1678_s2, %s1058_s16  ;;  %s1147_s27 = smul.u32 24, %s254_s13 }
  0x3a   : > { %s1518_s9 = scalar_lea.vmem %s1679_s3, %s1115_s17  ;;  %s287_s16 = sld [smem:[#allocation5 + %s1503_s29]] (!%p1065_p9) }
  0x3b   : > { %s1523_s14 = scalar_lea.vmem %s1680_s4, %s1147_s27 }
  0x3d   : > { %s1067_s2 = sshll.u32 (!%p1065_p9), %s289_s18, 7 }
  0x3e   : > { %s291_s23 = sshra.s32 %s1067_s2, 7 }
  0x40   : > { %s1066_s21 = sshll.u32 %s287_s16, 3 }
  0x41   : > { %s293_s17 = sshra.s32 %s1066_s21, 3 }
  0x42   : > { %s295_s24 = smul.u32 3, %s293_s17 }
  0x44   : > { %s296_s13 = sadd.s32 %s295_s24, %s291_s23 }
  0x45   : > { %s1068_s3 = sshll.u32 %s296_s13, 2 }
  0x46   : > { %s298_s26 = scalar_lea.vmem %s1660_s5, %s1068_s3 }
  0x47   : > { %v347_v0 = vld [vmem:[%s298_s26] sm:$0xff]  ;;  %v349_v1 = vld [vmem:[%s298_s26 + $0xc] sm:$0xff]  ;;  %v351_v2 = vld [vmem:[%s298_s26 + $0x18] sm:$0xff] }
  0x48   : > { %348 = vst [vmem:[#allocation2] sm:$0xff] %v347_v0  ;;  %350 = vst [vmem:[#allocation2 + $0x8] sm:$0xff] %v349_v1  ;;  %v353_v3 = vld [vmem:[%s298_s26 + $0x3c] sm:$0xff]  ;;  %v355_v4 = vld [vmem:[%s298_s26 + $0x48] sm:$0xff] }
  0x49   : > { %352 = vst [vmem:[#allocation2 + $0x10] sm:$0xff] %v351_v2  ;;  %v357_v5 = vld [vmem:[%s298_s26 + $0x54] sm:$0xff]  ;;  %354 = vst [vmem:[#allocation2 + $0x18] sm:$0xff] %v353_v3  ;;  %v361_v7 = vld [vmem:[%s298_s26 + $0x84] sm:$0xff] }
  0x4a   : > { %356 = vst [vmem:[#allocation2 + $0x20] sm:$0xff] %v355_v4  ;;  %358 = vst [vmem:[#allocation2 + $0x28] sm:$0xff] %v357_v5  ;;  %v359_v6 = vld [vmem:[%s298_s26 + $0x78] sm:$0xff]  ;;  %v363_v8 = vld [vmem:[%s298_s26 + $0x90] sm:$0xff] }
  0x4b   : > { %360 = vst [vmem:[#allocation2 + $0x30] sm:$0xff] %v359_v6  ;;  %362 = vst [vmem:[#allocation2 + $0x38] sm:$0xff] %v361_v7 }
  0x4c   : > { %364 = vst [vmem:[#allocation2 + $0x40] sm:$0xff] %v363_v8 }
  0x4d   : > { %372 = vsyncadd [#allocation3], 1152 }
  0x4e PF: > { %s1116_s2 = smul.u32 72, %s1507_s0  ;;  %s378_s10 = scalar_lea.sflag [#allocation3], %s1507_s0 }
  0x50   : > { %s1534_s3 = scalar_lea.vmem [#allocation2], %s1116_s2 }
  0x51   : > { %1342 = dma.done.wait %s378_s10, 1152 }
  0x52   : > { %1343 = vsyncadd %s378_s10, 4294966144  ;;  %s384_s28 = sadd.s32 1, %s1362_s8 }
  0x53   : > { %p1070_p10 = scmp.ge.s32.totalorder %s384_s28, 4 }
  0x54   : > { %s389_s27 = sadd.s32 (!%p1070_p10), 1, %s1503_s29  ;;  %s390_s16 = ssub.s32 (!%p1070_p10), 1, %s1507_s0 }
  0x55   : > { %388 = sbr.rel (%p1070_p10) target bundleno = 105 (0x69), region = 74  ;;  %s391_s18 = sld [smem:[#allocation5 + %s389_s27]] (!%p1070_p10) }
  0x56   : > { %s393_s21 = sld [smem:[#allocation6 + %s389_s27]] (!%p1070_p10)  ;;  %s1117_s23 = smul.u32 (!%p1070_p10), 72, %s390_s16 }
  0x57   : > { %s406_s4 = scalar_lea.sflag (!%p1070_p10), [#allocation3], %s390_s16 }
  0x58   : > { %s405_s25 = scalar_lea.vmem (!%p1070_p10), [#allocation2], %s1117_s23 }
  0x5b   : > { %s1071_s17 = sshll.u32 (!%p1070_p10), %s391_s18, 3 }
  0x5c   : > { %s1072_s24 = sshll.u32 %s393_s21, 7  ;;  %s397_s15 = sshra.s32 %s1071_s17, 3 }
  0x5d   : > { %s395_s13 = sshra.s32 %s1072_s24, 7  ;;  %s399_s26 = smul.u32 3, %s397_s15 }
  0x5f   : > { %s400_s2 = sadd.s32 %s399_s26, %s395_s13 }
  0x60   : > { %s1073_s10 = sshll.u32 %s400_s2, 2 }
  0x61   : > { %s402_s28 = scalar_lea.vmem %s1660_s5, %s1073_s10 }
  0x62   : > { %v455_v9 = vld [vmem:[%s402_s28] sm:$0xff]  ;;  %v457_v10 = vld [vmem:[%s402_s28 + $0xc] sm:$0xff]  ;;  %v459_v11 = vld [vmem:[%s402_s28 + $0x18] sm:$0xff] }
  0x63   : > { %456 = vst [vmem:[%s405_s25] sm:$0xff] %v455_v9  ;;  %458 = vst [vmem:[%s405_s25 + $0x8] sm:$0xff] %v457_v10  ;;  %v461_v12 = vld [vmem:[%s402_s28 + $0x3c] sm:$0xff]  ;;  %v463_v13 = vld [vmem:[%s402_s28 + $0x48] sm:$0xff] }
  0x64   : > { %460 = vst [vmem:[%s405_s25 + $0x10] sm:$0xff] %v459_v11  ;;  %v465_v14 = vld [vmem:[%s402_s28 + $0x54] sm:$0xff]  ;;  %462 = vst [vmem:[%s405_s25 + $0x18] sm:$0xff] %v461_v12  ;;  %v469_v16 = vld [vmem:[%s402_s28 + $0x84] sm:$0xff] }
  0x65   : > { %464 = vst [vmem:[%s405_s25 + $0x20] sm:$0xff] %v463_v13  ;;  %466 = vst [vmem:[%s405_s25 + $0x28] sm:$0xff] %v465_v14  ;;  %v467_v15 = vld [vmem:[%s402_s28 + $0x78] sm:$0xff]  ;;  %v471_v17 = vld [vmem:[%s402_s28 + $0x90] sm:$0xff] }
  0x66   : > { %468 = vst [vmem:[%s405_s25 + $0x30] sm:$0xff] %v467_v15  ;;  %470 = vst [vmem:[%s405_s25 + $0x38] sm:$0xff] %v469_v16 }
  0x67   : > { %472 = vst [vmem:[%s405_s25 + $0x40] sm:$0xff] %v471_v17 }
  0x68   : > { %480 = vsyncadd %s406_s4, 1152 }
  0x69 PF: > { %vm542_vm0 = vcmask 1043456   ;;  %v1382_v21 = vmov 0   ;;  %v481_v26 = vld [vmem:[%s1513_s22] sm:$0xf]  ;;  %vm538_vm1 = vcmask 195584   ;;  %v1242_v33 = vld [vmem:[%s1518_s9 + $0x48] sm:$0xff]  }
  0x6a   : > { %581 = vmatprep.mubr.bf16.mxu0 %v1382_v21  ;;  %v1240_v29 = vld [vmem:[%s1518_s9 + $0x40] sm:$0xff]   ;;  %v1243_v34 = vld [vmem:[%s1518_s9 + $0x8] sm:$0xff]   ;;  %v1244_v36 = vld [vmem:[%s1518_s9 + $0x50] sm:$0xff]   ;;  %vm882_vm2 = vcmask 64512   ;;  %s1148_s25 = smul.u32 384, %s1503_s29  ;;  %s902_s0 = sshll.u32 %s1525_s11, 4  ;;  %s1598_s0 = int_to_ptr.vmem [resolvable:$true] %s902_s0 }
  0x6b   : > { %v1241_v30 = vld [vmem:[%s1518_s9] sm:$0xff]   ;;  %1118 = vmatprep.subr.bf16.mxu1 %v1240_v29  ;;  %v1245_v39 = vld [vmem:[%s1518_s9 + $0x10] sm:$0xff]   ;;  %v1246_v41 = vld [vmem:[%s1518_s9 + $0x58] sm:$0xff]   ;;  %s1681_s29 = sand.u32 1, %s1354_s30   ;;  %s1383_s16 = smov [#allocation7]  }
  0x6c   : > { %1119 = vmatpush3.bf16.msra.mxu1 %v1241_v30  ;;  %v1247_v42 = vld [vmem:[%s1518_s9 + $0x18] sm:$0xff]   ;;  %v1248_v46 = vld [vmem:[%s1518_s9 + $0x60] sm:$0xff]   ;;  %v1250_v48 = vld [vmem:[%s1518_s9 + $0x68] sm:$0xff]   ;;  %s1604_s27 = scalar_lea.sflag [#allocation8], %s1681_s29  ;;  %s1284_s18 = sshll.u32 %s1383_s16, 4  ;;  %s1285_s18 = int_to_ptr.vmem [resolvable:$false] %s1284_s18 }
  0x6d   : > { %1120 = vmatprep.subr.bf16.mxu1 %v1242_v33  ;;  %v1249_v47 = vld [vmem:[%s1518_s9 + $0x20] sm:$0xff]   ;;  %v1251_v49 = vld [vmem:[%s1518_s9 + $0x28] sm:$0xff]   ;;  %v1252_v50 = vld [vmem:[%s1518_s9 + $0x70] sm:$0xff]   ;;  %s1286_s21 = scalar_lea.vmem %s1285_s18, 768  ;;  %p1287_p0 = scmp.lt.s32.totalorder %s1598_s0, %s1285_s18 }
  0x6e   : > { %v1225_v18 = vld [vmem:[%s1534_s3 + $0x4] ss:$8 sps:$4 sm:$0xff]   ;;  %v1227_v19 = vld [vmem:[%s1534_s3] ss:$8 sps:$4 sm:$0xff]   ;;  %v516_v20 = vld [vmem:[%s1534_s3 + $0x10] sm:$0xff] }
  0x6f   : > { %549 = vmatprep.subr.bf16.mxu0 %v1225_v18  ;;  %v1078_v22 = vcombine.high %v516_v20, %v516_v20  ;;  %v1077_v23 = vcombine.low %v516_v20, %v516_v20  ;;  %v1232_v25 = vld [vmem:[%s1534_s3 + $0x1c] ss:$8 sps:$4 sm:$0xff]   ;;  %v1230_v27 = vld [vmem:[%s1534_s3 + $0x18] ss:$8 sps:$4 sm:$0xff]   ;;  %v519_v28 = vld [vmem:[%s1534_s3 + $0x28] sm:$0xff] }
  0x70   : > { %550 = vmatpush1.bf16.msra.mxu0 %v1227_v19  ;;  %v1084_v31 = vcombine.high %v519_v28, %v519_v28  ;;  %v1083_v32 = vcombine.low %v519_v28, %v519_v28  ;;  %v1237_v35 = vld [vmem:[%s1534_s3 + $0x34] ss:$8 sps:$4 sm:$0xff]   ;;  %v522_v37 = vld [vmem:[%s1534_s3 + $0x40] sm:$0xff]  ;;  %v1235_v40 = vld [vmem:[%s1534_s3 + $0x30] ss:$8 sps:$4 sm:$0xff]   ;;  %1121 = vmatpush3.bf16.msra.mxu1 %v1243_v34  ;;  %s1596_s3 = scalar_lea.hbm %s1661_s6, %s1148_s25 }
  0x71   : > { %1079 = vmatprep.subr.msk.bf16.mxu0 %vm542_vm0, %v1078_v22  ;;  %v544_v24 = vsel %vm542_vm0, %v1077_v23, 0  ;;  %1122 = vmatprep.subr.bf16.mxu1 %v1244_v36  ;;  %v1090_v43 = vcombine.high %v522_v37, %v522_v37  ;;  %v1089_v44 = vcombine.low %v522_v37, %v522_v37  ;;  %v1253_v51 = vld [vmem:[%s1518_s9 + $0x30] sm:$0xff]   ;;  %v1254_v52 = vld [vmem:[%s1518_s9 + $0x78] sm:$0xff]   ;;  %v876_v14 = vld [vmem:[%s1523_s14] sm:$0xff] }
  0x72   : > { %v608_v38 = vsel %vm542_vm0, %v1083_v32, 0  ;;  %v1255_v53 = vld [vmem:[%s1518_s9 + $0x38] sm:$0xff]   ;;  %v877_v18 = vld [vmem:[%s1523_s14 + $0x8] sm:$0xff] }
  0x73   : > { %v672_v45 = vsel %vm542_vm0, %v1089_v44, 0 }
  0x74   : > { %552 = vmatpush1.bf16.msra.mxu0 %v544_v24  ;;  %1123 = vmatpush3.bf16.msra.mxu1 %v1245_v39  ;;  %v878_v24 = vld [vmem:[%s1523_s14 + $0x10] sm:$0xff]  ;;  %s1280_s14 = scalar_lea.vmem %s1598_s0, 384 }
  0x75   : > { %613 = vmatprep.subr.bf16.mxu0 %v1232_v25  ;;  %1124 = vmatprep.subr.bf16.mxu1 %v1246_v41  ;;  %p1281_p11 = scmp.ne.s32.totalorder %s1598_s0, %s1280_s14  ;;  %p1288_p2 = scmp.lt.s32.totalorder %s1286_s21, %s1280_s14 }
  0x77   : > { %1080 = vmatmul.mubr.msk.bf16.vlgmr.msra.gmra.mrb[0].mxu0 %vm538_vm1, %v481_v26  ;;  %p1282_p12 = pnand %p1281_p11, %p1480_p1  ;;  %p1289_p4 = por %p1288_p2, %p1287_p0 }
  0x78   : > { %614 = vmatpush1.bf16.msra.mxu0 %v1230_v27  ;;  %645 = vmatprep.mubr.bf16.mxu0 %v1382_v21 }
  0x79   : > { %1085 = vmatprep.subr.msk.bf16.mxu0 %vm542_vm0, %v1084_v31  ;;  %1125 = vmatpush3.bf16.msra.mxu1 %v1247_v42  ;;  %p1283_p13 = pneg %p1282_p12 }
  0x7a   : > { %1126 = vmatprep.subr.bf16.mxu1 %v1248_v46 }
  0x7b   : > { %p1290_p5 = pnand %p1289_p4, %p1283_p13 }
  0x7c   : > { %616 = vmatpush1.bf16.msra.mxu0 %v608_v38 }
  0x7d   : > { %677 = vmatprep.subr.bf16.mxu0 %v1237_v35  ;;  %1127 = vmatpush3.bf16.msra.mxu1 %v1249_v47 }
  0x7e   : > { %1128 = vmatprep.subr.bf16.mxu1 %v1250_v48 }
  0x7f   : > { %1086 = vmatmul.mubr.msk.bf16.vlgmr.msra.gmra.mrb[4].mxu0 %vm538_vm1, %v481_v26 }
  0x80   : > { %678 = vmatpush1.bf16.msra.mxu0 %v1235_v40  ;;  %709 = vmatprep.mubr.bf16.mxu0 %v1382_v21 }
  0x81   : > { %1091 = vmatprep.subr.msk.bf16.mxu0 %vm542_vm0, %v1090_v43  ;;  %1129 = vmatpush3.bf16.msra.mxu1 %v1251_v49 }
  0x82   : > { %1130 = vmatprep.subr.bf16.mxu1 %v1252_v50 }
  0x84   : > { %680 = vmatpush1.bf16.msra.mxu0 %v672_v45 }
  0x85   : > { %1131 = vmatpush3.bf16.msra.mxu1 %v1253_v51 }
  0x86   : > { %1132 = vmatprep.subr.bf16.mxu1 %v1254_v52 }
  0x87   : > { %1092 = vmatmul.mubr.msk.bf16.vlgmr.msra.gmra.mrb[8].mxu0 %vm538_vm1, %v481_v26 }
  0x89   : > { %1133 = vmatpush3.bf16.msra.mxu1 %v1255_v53 }
 0x14a   : > { %v583_v54 = vpop.f32.mrb[0].mxu0 }
 0x14b   : > { %v585_v55 = vpop.f32.mrb[1].mxu0  ;;  %v590_v63 = vpack.c.bf16 %v583_v54, %v583_v54 }
 0x14c   : > { %v587_v56 = vpop.f32.mrb[2].mxu0  ;;  %v591_v2 = vpack.c.bf16 %v585_v55, %v585_v55 }
 0x14d   : > { %v588_v57 = vpop.f32.mrb[3].mxu0 }
 0x152   : > { %v647_v58 = vpop.f32.mrb[4].mxu0 }
 0x153   : > { %v654_v59 = vpack.c.bf16 %v647_v58, %v647_v58  ;;  %v649_v60 = vpop.f32.mrb[5].mxu0 }
 0x154   : > { %v655_v61 = vpack.c.bf16 %v649_v60, %v649_v60  ;;  %v651_v62 = vpop.f32.mrb[6].mxu0 }
 0x155   : > { %v722_v0 = vrot.slane %v654_v59, 4  ;;  %v652_v1 = vpop.f32.mrb[7].mxu0 }
 0x156   : > { %v723_v3 = vrot.slane %v655_v61, 4 }
 0x157   : > { %v726_v4 = vsel %vm542_vm0, %v590_v63, %v722_v0 }
 0x158   : > { %v730_v5 = vsel %vm542_vm0, %v591_v2, %v723_v3 }
 0x159   : > { %860 = vmatprep.mubr.bf16.mxu1 %v730_v5 }
 0x15a   : > { %861 = vmatmul.mubr.bf16.vlgmr.msra.gmra.mrb[0].mxu1 %v726_v4  ;;  %v711_v6 = vpop.f32.mrb[8].mxu0 }
 0x15b   : > { %v713_v7 = vpop.f32.mrb[9].mxu0  ;;  %v718_v11 = vpack.c.bf16 %v711_v6, %v711_v6 }
 0x15c   : > { %v719_v8 = vpack.c.bf16 %v713_v7, %v713_v7  ;;  %v715_v9 = vpop.f32.mrb[10].mxu0 }
 0x15d   : > { %v716_v10 = vpop.f32.mrb[11].mxu0 }
 0x15e   : > { %868 = vmatprep.mubr.bf16.mxu1 %v719_v8 }
 0x162   : > { %869 = vmatmul.mubr.bf16.gmra.mrb[4].mxu1 %v718_v11 }
 0x22d   : > { %v1134_v12 = vpop.f32.mrb[0].mxu1 }
 0x22e   : > { %v1135_v13 = vpop.f32.mrb[1].mxu1 }
 0x22f   : > { %v1136_v15 = vadd.f32 %v1135_v13, %v1134_v12  ;;  %v1137_v16 = vpop.f32.mrb[2].mxu1 }
 0x230   : > { %v1138_v17 = vpop.f32.mrb[3].mxu1 }
 0x231   : > { %v879_v19 = vadd.f32 %v1136_v15, %v876_v14  ;;  %v1139_v20 = vadd.f32 %v1138_v17, %v1137_v16 }
 0x233   : > { %883 = vst.msk [vmem:[%s1525_s11] sm:$0xff] %vm882_vm2, %v879_v19  ;;  %v880_v21 = vadd.f32 %v1139_v20, %v877_v18 }
 0x235   : > { %884 = vst.msk [vmem:[%s1525_s11 + $0x8] sm:$0xff] %vm882_vm2, %v880_v21  ;;  %v1140_v22 = vpop.f32.mrb[4].mxu1 }
 0x236   : > { %v1141_v23 = vpop.f32.mrb[5].mxu1 }
 0x237   : > { %v1142_v25 = vadd.f32 %v1141_v23, %v1140_v22  ;;  %v1143_v26 = vpop.f32.mrb[6].mxu1 }
 0x238   : > { %v1144_v27 = vpop.f32.mrb[7].mxu1 }
 0x239   : > { %v881_v28 = vadd.f32 %v1142_v25, %v878_v24 }
 0x23b   : > { %885 = vst.msk [vmem:[%s1525_s11 + $0x10] sm:$0xff] %vm882_vm2, %v881_v28 }
 0x23c   : > { %1293 = shalt.err (!%p1290_p5)
}
 0x23d   : > { %s1294_s11 = scalar_lea.hbm %s1596_s3, 384  ;;  %s1298_s24 = scalar_lea.hbm %s1661_s6, 3072 }
 0x23e   : > { %p1295_p6 = scmp.ne.s32.totalorder %s1596_s3, %s1294_s11  ;;  %p1299_p9 = scmp.lt.u32.totalorder %s1596_s3, %s1661_s6 }
 0x23f   : > { %p1300_p10 = scmp.lt.u32.totalorder %s1298_s24, %s1294_s11  ;;  %p1302_p12 = scmp.lt.u32.totalorder %s1294_s11, %s1596_s3 }
 0x240   : > { %p1296_p7 = pnand %p1295_p6, %p1480_p1 }
 0x241   : > { %p1301_p11 = por %p1300_p10, %p1299_p9 }
 0x242   : > { %p1297_p8 = pneg %p1296_p7 }
 0x243   : > { %p1303_p13 = por %p1302_p12, %p1301_p11 }
 0x245   : > { %p1304_p0 = pnand %p1303_p13, %p1297_p8 }
 0x247   : > { %1307 = shalt.err (!%p1304_p0)
}
 0x248   : > { %s1384_s26 = smov 128   ;;  %s1385_s2 = smov 8  }
 0x249   : > { %1149 = dma.vmem_to_hbm [thread:$0]  (%p1480_p1), %s1598_s0, 384, %s1596_s3, %s1604_s27, %s1384_s26, %s1384_s26, %s1385_s2  }
 0x24a PF: > { %p1155_p2 = scmp.ge.s32.totalorder %s1378_s12, 2  ;;  %s917_s10 = sand.u32 1, %s1350_s1  }
 0x24b   : > { %s918_s8 = scalar_lea.sflag [#allocation8], %s917_s10 }
 0x24c   : > { %p1152_p4 = pnand %p1155_p2, %p1486_p3 }
 0x24e   : > { %1345 = dma.done.wait (!%p1152_p4), %s918_s8, 384  }
 0x24f   : > { %1347 = vsyncadd (!%p1152_p4), %s918_s8, 4294966912  ;;  %s29_s12 = sadd.s32 1, %s1378_s12   ;;  %s1682_s28 = sld [smem:[#allocation18_spill]] }
 0x250   : > { %p26_p5 = scmp.ge.s32.totalorder %s29_s12, 10   ;;  %s1683_s8 = sld [smem:[#allocation14_spill]] }
 0x251   : > { %s1684_s9 = sld [smem:[#allocation15_spill]]  ;;  %s1685_s10 = sld [smem:[#allocation16_spill]] }
 0x252   : > { %s1686_s11 = sld [smem:[#allocation17_spill]]  ;;  %s1687_s1 = smov %s1354_s30 }
 0x253   : > { %s1688_s30 = smov %s1358_s7  ;;  %28 = sbr.rel (!%p26_p5) target bundleno = 32 (0x20), region = 172 }
 0x255   : > { %s1689_s7 = smov %s1682_s28 }
 0x25a   :  { %923 = vsyncpa [#allocation8], 1 }
 0x25b   :  { %925 = vsyncpa [#allocation8 + $0x1], 1 }
 0x25c   :  { %926 = vsyncmov [#allocation3] }
 0x25f   :  { %s927_s19 = vpop.sfrf %926 }
 0x260   :  { %p1113_p1 = scmp.ne.s32.totalorder %s927_s19, 0 }
 0x262   :  { %931 = shalt.err (%p1113_p1)  }
 0x263   :  { %933 = vsyncmov [#allocation3 + $0x1] }
 0x266   :  { %s934_s20 = vpop.sfrf %933 }
 0x267   :  { %p1114_p3 = scmp.ne.s32.totalorder %s934_s20, 0 }
 0x269   :  { %938 = shalt.err (%p1114_p3)  }

</bundles_post_ra>
